<compile_context>
chip_gen: v7x
topology: tpu7x:2x2x1
jax: 0.10.0
libtpu: 0.0.40
codegen_flags: <defaults>
</compile_context>

<pallas_src>
import jax
import jax.numpy as jnp
from jax.experimental import pallas as pl
from jax.experimental.pallas import tpu as pltpu


def _make_kernel(Wp, HWp):
    """Build the per-image kernel; Wp (padded row width) and HWp = H*Wp are static."""
    TAPS = [(ki, kj) for ki in range(3) for kj in range(3)]

    def kernel(x2_ref, xpad_ref, w_ref, b_ref, o_ref):
        # x2_ref  : SMEM (1,)         scalar added before the relu
        # xpad_ref: (1, C, Hp*Wp)     one image, channel-major, spatially padded with -x2
        # w_ref   : (9, Cout, Cin)    fused (1x1 o 3x3) weights, tap-major (kh*3+kw)
        # b_ref   : (Cout, 1)         fused bias
        # o_ref   : (1, Cout, H*Wp)   channel-major output; last 2 columns of each row
        #                             are garbage and dropped in the wrapper.
        x2 = x2_ref[0]

        # relu(x + x2): lane-dense elementwise; the -x2 halo becomes an exact zero,
        # i.e. the conv's zero padding.
        v3 = jnp.maximum(xpad_ref[0] + x2, jnp.float32(0.0))          # (C, Hp*Wp)

        acc = None
        for t, (ki, kj) in enumerate(TAPS):
            d = ki * Wp + kj
            # Shifted full-row slab: slab[c, h*Wp + w] = v3[c, ki+h, kj+w] for w < W.
            # (lane shift only -> XLU work, which is idle here)
            slab = v3[:, d:d + HWp]                                    # (Cin, H*Wp)
            p = jnp.dot(w_ref[t], slab, preferred_element_type=jnp.float32)
            acc = p if acc is None else acc + p                        # f32 vreg accum
        o_ref[0] = (acc + b_ref[...]).astype(o_ref.dtype)              # lane-dense store

    return kernel


def model_forward(x1_nchw, x2_scalar, w1_oihw, b1, w2_oihw, b2):
    """x1_nchw: (N, C, H, W) float32; x2_scalar: scalar. Returns (N, C, H, W)."""
    N, C, H, W = x1_nchw.shape
    Hp, Wp = H + 3, W + 2          # 1 top + 2 bottom rows, 1 left + 1 right columns
    HWp = H * Wp                   # (the extra bottom row keeps every tap slab in bounds)

    x2 = jnp.asarray(x2_scalar, dtype=jnp.float32)

    # Pad spatially with -x2 so relu(pad + x2) == 0, then flatten (Hp, Wp) into lanes.
    x_pad = jax.lax.pad(
        x1_nchw.astype(jnp.float32), -x2,
        ((0, 0, 0), (0, 0, 0), (1, 2, 0), (1, 1, 0)))                  # (N, C, Hp, Wp)
    x_flat = x_pad.reshape(N, C, Hp * Wp)

    # Trace-time fusion of conv2 (1x1) o conv1 (3x3), in the transposed (Cout, Cin) form.
    w2_2d = w2_oihw[:, :, 0, 0].astype(jnp.float32)                    # (Cout, Cmid)
    w_tap = jnp.einsum("om,mckw->kwoc", w2_2d,
                       w1_oihw.astype(jnp.float32)).reshape(9, C, C)   # (9, Cout, Cin)
    b_fused = (w2_2d @ b1.astype(jnp.float32)
               + b2.astype(jnp.float32)).reshape(C, 1)                 # (Cout, 1)

    out_flat = pl.pallas_call(
        _make_kernel(Wp, HWp),
        out_shape=jax.ShapeDtypeStruct((N, C, HWp), jnp.float32),
        grid_spec=pltpu.PrefetchScalarGridSpec(
            num_scalar_prefetch=0,
            grid=(N,),                                                  # one image / step
            in_specs=[
                pl.BlockSpec(memory_space=pltpu.SMEM),                  # x2 scalar
                pl.BlockSpec((1, C, Hp * Wp), lambda n: (n, 0, 0)),     # padded image
                pl.BlockSpec((9, C, C), lambda n: (0, 0, 0)),           # fused taps
                pl.BlockSpec((C, 1), lambda n: (0, 0)),                 # fused bias
            ],
            out_specs=pl.BlockSpec((1, C, HWp), lambda n: (n, 0, 0)),
        ),
        compiler_params=pltpu.CompilerParams(
            dimension_semantics=("parallel",)),
    )(x2.reshape(1), x_flat, w_tap, b_fused)

    # (N, C, H*Wp) -> (N, C, H, Wp) -> drop the 2 garbage columns per row -> NCHW.
    return out_flat.reshape(N, C, H, Wp)[:, :, :, :W]


def _reference(x1_nchw, x2_scalar, w1_oihw, b1, w2_oihw, b2):
    v3 = jax.nn.relu(x1_nchw + x2_scalar)
    v4 = jax.lax.conv_general_dilated(
        v3, w1_oihw, window_strides=(1, 1), padding=((1, 1), (1, 1)),
        dimension_numbers=("NCHW", "OIHW", "NCHW"))
    v4 = v4 + b1.reshape(1, -1, 1, 1)
    v5 = jax.lax.conv_general_dilated(
        v4, w2_oihw, window_strides=(1, 1), padding=((0, 0), (0, 0)),
        dimension_numbers=("NCHW", "OIHW", "NCHW"))
    return v5 + b2.reshape(1, -1, 1, 1)


if __name__ == "__main__":
    # Small shapes consistent with the module (channels must be 16 for Conv2d(16,16,...))
    N, C, H, W = 2, 16, 16, 16
    key = jax.random.PRNGKey(0)
    k_x, k_w1, k_b1, k_w2, k_b2 = jax.random.split(key, 5)

    x1 = jax.random.normal(k_x, (N, C, H, W), dtype=jnp.float32)
    x2 = 1.0  # scalar, as in the PyTorch test (x2 = 1)

    # Deterministic synthetic parameters (PyTorch conv weight layout OIHW)
    w1 = jax.random.normal(k_w1, (C, C, 3, 3), dtype=jnp.float32) * 0.1
    b1 = jax.random.normal(k_b1, (C,), dtype=jnp.float32) * 0.1
    w2 = jax.random.normal(k_w2, (C, C, 1, 1), dtype=jnp.float32) * 0.1
    b2 = jax.random.normal(k_b2, (C,), dtype=jnp.float32) * 0.1

    fwd = jax.jit(model_forward)
    out = jax.block_until_ready(fwd(x1, x2, w1, b1, w2, b2))
    ref = jax.block_until_ready(_reference(x1, x2, w1, b1, w2, b2))

    assert out.shape == (N, C, H, W)
    assert jnp.allclose(out, ref, atol=1e-3, rtol=1e-3), "mismatch vs reference"

    print("KERNEL_OK")
</pallas_src>

<mosaic_0001>
module attributes {stable_mosaic.version = 11 : i64} {
  func.func @kernel(%arg0: i32, %arg1: memref<1xf32, #tpu.memory_space<smem>>, %arg2: memref<1x16x342xf32, #tpu.memory_space<vmem>>, %arg3: memref<9x16x16xf32, #tpu.memory_space<vmem>>, %arg4: memref<16x1xf32, #tpu.memory_space<vmem>>, %arg5: memref<1x16x288xf32, #tpu.memory_space<vmem>>) attributes {dimension_semantics = [#tpu.dimension_semantics<parallel>], iteration_bounds = array<i64: 2>, scalar_prefetch = 0 : i64, scratch_operands = 0 : i64, tpu.core_type = #tpu.core_type<tc>, window_params = [{transform_indices = @transform_0, window_bounds = array<i64: 1>}, {transform_indices = @transform_1, window_bounds = array<i64: 1, 16, 342>}, {pipeline_mode = #tpu.pipeline_mode<synchronous>, transform_indices = @transform_2, window_bounds = array<i64: 9, 16, 16>}, {pipeline_mode = #tpu.pipeline_mode<synchronous>, transform_indices = @transform_3, window_bounds = array<i64: 16, 1>}, {transform_indices = @transform_4, window_bounds = array<i64: 1, 16, 288>}]} {
    %c0 = arith.constant 0 : index
    %0 = memref.load %arg1[%c0] : memref<1xf32, #tpu.memory_space<smem>>
    %c0_0 = arith.constant 0 : index
    %c0_1 = arith.constant 0 : index
    %c0_2 = arith.constant 0 : index
    %1 = vector.load %arg2[%c0_0, %c0_1, %c0_2] : memref<1x16x342xf32, #tpu.memory_space<vmem>>, vector<1x16x342xf32>
    %2 = vector.shape_cast %1 : vector<1x16x342xf32> to vector<16x342xf32>
    %3 = vector.broadcast %0 : f32 to vector<16x342xf32>
    %4 = arith.addf %2, %3 : vector<16x342xf32>
    %cst = arith.constant 0.000000e+00 : f32
    %5 = vector.broadcast %cst : f32 to vector<16x342xf32>
    %6 = arith.maximumf %4, %5 : vector<16x342xf32>
    %7 = vector.extract_strided_slice %6 {offsets = [0, 0], sizes = [16, 288], strides = [1, 1]} : vector<16x342xf32> to vector<16x288xf32>
    %c0_3 = arith.constant 0 : index
    %c0_4 = arith.constant 0 : index
    %c0_5 = arith.constant 0 : index
    %8 = vector.load %arg3[%c0_3, %c0_4, %c0_5] : memref<9x16x16xf32, #tpu.memory_space<vmem>>, vector<1x16x16xf32>
    %9 = vector.shape_cast %8 : vector<1x16x16xf32> to vector<16x16xf32>
    %cst_6 = arith.constant dense<0.000000e+00> : vector<16x288xf32>
    %10 = tpu.matmul %9, %7, %cst_6 {dimension_numbers = #tpu.dot_dimension_numbers<[1], [0], [0], [1], [0, 0, 1, 1], [], []>} : vector<16x16xf32>, vector<16x288xf32>, vector<16x288xf32> -> vector<16x288xf32>
    %11 = vector.extract_strided_slice %6 {offsets = [0, 1], sizes = [16, 288], strides = [1, 1]} : vector<16x342xf32> to vector<16x288xf32>
    %c1 = arith.constant 1 : index
    %c0_7 = arith.constant 0 : index
    %c0_8 = arith.constant 0 : index
    %12 = vector.load %arg3[%c1, %c0_7, %c0_8] : memref<9x16x16xf32, #tpu.memory_space<vmem>>, vector<1x16x16xf32>
    %13 = vector.shape_cast %12 : vector<1x16x16xf32> to vector<16x16xf32>
    %cst_9 = arith.constant dense<0.000000e+00> : vector<16x288xf32>
    %14 = tpu.matmul %13, %11, %cst_9 {dimension_numbers = #tpu.dot_dimension_numbers<[1], [0], [0], [1], [0, 0, 1, 1], [], []>} : vector<16x16xf32>, vector<16x288xf32>, vector<16x288xf32> -> vector<16x288xf32>
    %15 = arith.addf %10, %14 : vector<16x288xf32>
    %16 = vector.extract_strided_slice %6 {offsets = [0, 2], sizes = [16, 288], strides = [1, 1]} : vector<16x342xf32> to vector<16x288xf32>
    %c2 = arith.constant 2 : index
    %c0_10 = arith.constant 0 : index
    %c0_11 = arith.constant 0 : index
    %17 = vector.load %arg3[%c2, %c0_10, %c0_11] : memref<9x16x16xf32, #tpu.memory_space<vmem>>, vector<1x16x16xf32>
    %18 = vector.shape_cast %17 : vector<1x16x16xf32> to vector<16x16xf32>
    %cst_12 = arith.constant dense<0.000000e+00> : vector<16x288xf32>
    %19 = tpu.matmul %18, %16, %cst_12 {dimension_numbers = #tpu.dot_dimension_numbers<[1], [0], [0], [1], [0, 0, 1, 1], [], []>} : vector<16x16xf32>, vector<16x288xf32>, vector<16x288xf32> -> vector<16x288xf32>
    %20 = arith.addf %15, %19 : vector<16x288xf32>
    %21 = vector.extract_strided_slice %6 {offsets = [0, 18], sizes = [16, 288], strides = [1, 1]} : vector<16x342xf32> to vector<16x288xf32>
    %c3 = arith.constant 3 : index
    %c0_13 = arith.constant 0 : index
    %c0_14 = arith.constant 0 : index
    %22 = vector.load %arg3[%c3, %c0_13, %c0_14] : memref<9x16x16xf32, #tpu.memory_space<vmem>>, vector<1x16x16xf32>
    %23 = vector.shape_cast %22 : vector<1x16x16xf32> to vector<16x16xf32>
    %cst_15 = arith.constant dense<0.000000e+00> : vector<16x288xf32>
    %24 = tpu.matmul %23, %21, %cst_15 {dimension_numbers = #tpu.dot_dimension_numbers<[1], [0], [0], [1], [0, 0, 1, 1], [], []>} : vector<16x16xf32>, vector<16x288xf32>, vector<16x288xf32> -> vector<16x288xf32>
    %25 = arith.addf %20, %24 : vector<16x288xf32>
    %26 = vector.extract_strided_slice %6 {offsets = [0, 19], sizes = [16, 288], strides = [1, 1]} : vector<16x342xf32> to vector<16x288xf32>
    %c4 = arith.constant 4 : index
    %c0_16 = arith.constant 0 : index
    %c0_17 = arith.constant 0 : index
    %27 = vector.load %arg3[%c4, %c0_16, %c0_17] : memref<9x16x16xf32, #tpu.memory_space<vmem>>, vector<1x16x16xf32>
    %28 = vector.shape_cast %27 : vector<1x16x16xf32> to vector<16x16xf32>
    %cst_18 = arith.constant dense<0.000000e+00> : vector<16x288xf32>
    %29 = tpu.matmul %28, %26, %cst_18 {dimension_numbers = #tpu.dot_dimension_numbers<[1], [0], [0], [1], [0, 0, 1, 1], [], []>} : vector<16x16xf32>, vector<16x288xf32>, vector<16x288xf32> -> vector<16x288xf32>
    %30 = arith.addf %25, %29 : vector<16x288xf32>
    %31 = vector.extract_strided_slice %6 {offsets = [0, 20], sizes = [16, 288], strides = [1, 1]} : vector<16x342xf32> to vector<16x288xf32>
    %c5 = arith.constant 5 : index
    %c0_19 = arith.constant 0 : index
    %c0_20 = arith.constant 0 : index
    %32 = vector.load %arg3[%c5, %c0_19, %c0_20] : memref<9x16x16xf32, #tpu.memory_space<vmem>>, vector<1x16x16xf32>
    %33 = vector.shape_cast %32 : vector<1x16x16xf32> to vector<16x16xf32>
    %cst_21 = arith.constant dense<0.000000e+00> : vector<16x288xf32>
    %34 = tpu.matmul %33, %31, %cst_21 {dimension_numbers = #tpu.dot_dimension_numbers<[1], [0], [0], [1], [0, 0, 1, 1], [], []>} : vector<16x16xf32>, vector<16x288xf32>, vector<16x288xf32> -> vector<16x288xf32>
    %35 = arith.addf %30, %34 : vector<16x288xf32>
    %36 = vector.extract_strided_slice %6 {offsets = [0, 36], sizes = [16, 288], strides = [1, 1]} : vector<16x342xf32> to vector<16x288xf32>
    %c6 = arith.constant 6 : index
    %c0_22 = arith.constant 0 : index
    %c0_23 = arith.constant 0 : index
    %37 = vector.load %arg3[%c6, %c0_22, %c0_23] : memref<9x16x16xf32, #tpu.memory_space<vmem>>, vector<1x16x16xf32>
    %38 = vector.shape_cast %37 : vector<1x16x16xf32> to vector<16x16xf32>
    %cst_24 = arith.constant dense<0.000000e+00> : vector<16x288xf32>
    %39 = tpu.matmul %38, %36, %cst_24 {dimension_numbers = #tpu.dot_dimension_numbers<[1], [0], [0], [1], [0, 0, 1, 1], [], []>} : vector<16x16xf32>, vector<16x288xf32>, vector<16x288xf32> -> vector<16x288xf32>
    %40 = arith.addf %35, %39 : vector<16x288xf32>
    %41 = vector.extract_strided_slice %6 {offsets = [0, 37], sizes = [16, 288], strides = [1, 1]} : vector<16x342xf32> to vector<16x288xf32>
    %c7 = arith.constant 7 : index
    %c0_25 = arith.constant 0 : index
    %c0_26 = arith.constant 0 : index
    %42 = vector.load %arg3[%c7, %c0_25, %c0_26] : memref<9x16x16xf32, #tpu.memory_space<vmem>>, vector<1x16x16xf32>
    %43 = vector.shape_cast %42 : vector<1x16x16xf32> to vector<16x16xf32>
    %cst_27 = arith.constant dense<0.000000e+00> : vector<16x288xf32>
    %44 = tpu.matmul %43, %41, %cst_27 {dimension_numbers = #tpu.dot_dimension_numbers<[1], [0], [0], [1], [0, 0, 1, 1], [], []>} : vector<16x16xf32>, vector<16x288xf32>, vector<16x288xf32> -> vector<16x288xf32>
    %45 = arith.addf %40, %44 : vector<16x288xf32>
    %46 = vector.extract_strided_slice %6 {offsets = [0, 38], sizes = [16, 288], strides = [1, 1]} : vector<16x342xf32> to vector<16x288xf32>
    %c8 = arith.constant 8 : index
    %c0_28 = arith.constant 0 : index
    %c0_29 = arith.constant 0 : index
    %47 = vector.load %arg3[%c8, %c0_28, %c0_29] : memref<9x16x16xf32, #tpu.memory_space<vmem>>, vector<1x16x16xf32>
    %48 = vector.shape_cast %47 : vector<1x16x16xf32> to vector<16x16xf32>
    %cst_30 = arith.constant dense<0.000000e+00> : vector<16x288xf32>
    %49 = tpu.matmul %48, %46, %cst_30 {dimension_numbers = #tpu.dot_dimension_numbers<[1], [0], [0], [1], [0, 0, 1, 1], [], []>} : vector<16x16xf32>, vector<16x288xf32>, vector<16x288xf32> -> vector<16x288xf32>
    %50 = arith.addf %45, %49 : vector<16x288xf32>
    %c0_31 = arith.constant 0 : index
    %c0_32 = arith.constant 0 : index
    %51 = vector.load %arg4[%c0_31, %c0_32] : memref<16x1xf32, #tpu.memory_space<vmem>>, vector<16x1xf32>
    %52 = vector.broadcast %51 : vector<16x1xf32> to vector<16x288xf32>
    %53 = arith.addf %50, %52 : vector<16x288xf32>
    %c0_33 = arith.constant 0 : index
    %c0_34 = arith.constant 0 : index
    %c0_35 = arith.constant 0 : index
    %54 = vector.load %arg5[%c0_33, %c0_34, %c0_35] : memref<1x16x288xf32, #tpu.memory_space<vmem>>, vector<1x16x288xf32>
    %55 = vector.shape_cast %54 : vector<1x16x288xf32> to vector<16x288xf32>
    %56 = vector.shape_cast %53 : vector<16x288xf32> to vector<1x16x288xf32>
    tpu.vector_store %arg5[%c0_33, %c0_34, %c0_35], %56 {strides = array<i32>} : memref<1x16x288xf32, #tpu.memory_space<vmem>>, vector<1x16x288xf32>,
    return
  }
  func.func @transform_0(%arg0: i32) -> i32 {
    %c0_i32 = arith.constant 0 : i32
    %c0_i32_0 = arith.constant 0 : i32
    return %c0_i32 : i32
  }
  func.func @transform_1(%arg0: i32) -> (i32, i32, i32) {
    %c0_i32 = arith.constant 0 : i32
    %c0_i32_0 = arith.constant 0 : i32
    %c0_i32_1 = arith.constant 0 : i32
    return %arg0, %c0_i32, %c0_i32_0 : i32, i32, i32
  }
  func.func @transform_2(%arg0: i32) -> (i32, i32, i32) {
    %c0_i32 = arith.constant 0 : i32
    %c0_i32_0 = arith.constant 0 : i32
    %c0_i32_1 = arith.constant 0 : i32
    %c0_i32_2 = arith.constant 0 : i32
    return %c0_i32, %c0_i32_0, %c0_i32_1 : i32, i32, i32
  }
  func.func @transform_3(%arg0: i32) -> (i32, i32) {
    %c0_i32 = arith.constant 0 : i32
    %c0_i32_0 = arith.constant 0 : i32
    %c0_i32_1 = arith.constant 0 : i32
    return %c0_i32, %c0_i32_0 : i32, i32
  }
  func.func @transform_4(%arg0: i32) -> (i32, i32, i32) {
    %c0_i32 = arith.constant 0 : i32
    %c0_i32_0 = arith.constant 0 : i32
    %c0_i32_1 = arith.constant 0 : i32
    return %arg0, %c0_i32, %c0_i32_0 : i32, i32, i32
  }
}

</mosaic_0001>

<bundles_post_ra>
// kernel: model_forward.1
= control target key start
LH: loop header
LB: loop body
LE: loop exit
PB: predicated region body
PF: predicated region fallthrough
CT: control target
= control target key end

     0   :  { %s2447_s17 = smov 0   ;;  %s2747_s0 = inlined_call_operand.<no memory space> [shape: f32[1], index: 0, kind: input, shape index: {}]   ;;  %s2748_s1 = inlined_call_operand.vmem [shape: f32[2,16,342], index: 1, kind: input, shape index: {}]   ;;  %s2749_s2 = inlined_call_operand.vmem [shape: f32[9,16,16], index: 2, kind: input, shape index: {}]   ;;  %s2750_s3 = inlined_call_operand.vmem [shape: f32[16,1], index: 3, kind: input, shape index: {}]   ;;  %s2751_s4 = inlined_call_operand.vmem [shape: f32[2,16,288], index: 4, kind: output, shape index: {}]  }
   0x1   :  { %9 = sst [smem:[#allocation2]] %s2747_s0 }
   0x2 LB: > { %s1980_s18 = sadd.s32 4294967295, %s2407_s17   ;;  %p1984_p0 = scmp.ge.s32.totalorder %s2407_s17, 1  ;;  %s2407_s17 = sphi %s2447_s17, %s15_s17  }
   0x3   : > { %p163_p1 = scmp.lt.s32.totalorder %s2407_s17, 3 }
   0x5   : > { %p164_p2 = pnand %p1984_p0, %p163_p1 }
   0x6   : > { %p189_p3 = scmp.lt.s32.totalorder (!%p164_p2), %s1980_s18, 1  ;;  %s199_s19 = sld [smem:[#allocation2]] (!%p164_p2)  ;;  %v2411_v22 = vmov (!%p164_p2), 0.0   ;;  %v1900_v26 = vld [vmem:[%s2750_s3] sm:$0xff] (!%p164_p2)  ;;  %v1901_v27 = vld [vmem:[%s2750_s3 + $0x8] sm:$0xff] (!%p164_p2)  ;;  %v2418_v28 = vmov (!%p164_p2), 0  }
   0x7   : > { %167 = sbr.rel (%p164_p2) target bundleno = 445 (0x1bd), region = 36  ;;  %s2409_s23 = smov (!%p164_p2), 127   ;;  %324 = vmatprep.mubr.f32.mxu1 (!%p164_p2), %v2411_v22  ;;  %666 = vmatprep.mubr.f32.mxu0 (!%p164_p2), %v2411_v22  ;;  %vm242_vm0 = vcmask (!%p164_p2), 1039360   ;;  %vm585_vm1 = vcmask (!%p164_p2), 1031168   ;;  %v1987_v55 = vld [vmem:[%s2749_s2 + $0x10] sm:$0xff] (!%p164_p2)  ;;  %vm253_vm2 = vcmask (!%p164_p2), 130048  }
   0x8   : > { %s2410_s24 = smov (!%p164_p2), 126   ;;  %s2412_s25 = smov (!%p164_p2), 110   ;;  %2399 = vset.pattern.permute.xlu0 (!%p164_p2), %v2418_v28  ;;  %2400 = vset.pattern.permute.xlu1 (!%p164_p2), %v2418_v28  ;;  %vm775_vm3 = vcmask (!%p164_p2), 900096   ;;  %vm965_vm4 = vcmask (!%p164_p2), 891904   ;;  %v219_v28 = vld [vmem:[%s2749_s2] sm:$0xff] (!%p164_p2)  ;;  %vm1155_vm5 = vcmask (!%p164_p2), 883712  }
   0x9   : > { %s2413_s26 = smov (!%p164_p2), 109   ;;  %s2414_s27 = smov (!%p164_p2), 108   ;;  %vm1345_vm6 = vcmask (!%p164_p2), 752640   ;;  %vm1535_vm7 = vcmask (!%p164_p2), 744448   ;;  %vm1725_vm8 = vcmask (!%p164_p2), 736256   ;;  %vm1920_vm9 = vcmask (!%p164_p2), 261120  }
   0xa   : > { %s2415_s28 = smov (!%p164_p2), 92   ;;  %s2416_s29 = smov (!%p164_p2), 91  }
   0xb   : > { %s2417_s30 = smov (!%p164_p2), 90  }
   0xc   : > { %v206_v0 = vstv (!%p164_p2), %s199_s19 }
   0xe   : > { %s2753_s18 = smov (!%p189_p3, %s1980_s18), 1 }
   0xf   : > { %s2260_s0 = smul.u32 48, %s2753_s18 }
  0x11   : > { %s193_s22 = scalar_lea.vmem %s2748_s1, %s2260_s0 }
  0x12   : > { %v201_v1 = vld [vmem:[%s193_s22 + $0x8] sm:$0xff]  ;;  %v202_v2 = vld [vmem:[%s193_s22 + $0x10] sm:$0xff]  ;;  %v200_v3 = vld [vmem:[%s193_s22] sm:$0xff] }
  0x13   : > { %v208_v4 = vadd.f32 %v206_v0, %v201_v1  ;;  %v209_v5 = vadd.f32 %v206_v0, %v202_v2  ;;  %v203_v6 = vld [vmem:[%s193_s22 + $0x18] sm:$0xff]  ;;  %v207_v7 = vadd.f32 %v206_v0, %v200_v3  ;;  %v204_v8 = vld [vmem:[%s193_s22 + $0x20] sm:$0xff]  ;;  %v205_v9 = vld [vmem:[%s193_s22 + $0x28] sm:$0xff] }
  0x14   : > { %v210_v10 = vadd.f32 %v206_v0, %v203_v6  ;;  %v211_v11 = vadd.f32 %v206_v0, %v204_v8  ;;  %v212_v12 = vadd.f32 %v206_v0, %v205_v9  ;;  %v1988_v3 = vld [vmem:[%s2749_s2 + $0x18] sm:$0xff] }
  0x15   : > { %v214_v13 = vmax.f32 %v208_v4, 0.0  ;;  %v215_v14 = vmax.f32 %v209_v5, 0.0  ;;  %v213_v15 = vmax.f32 %v207_v7, 0.0  ;;  %v2511_v4 = vld [vmem:[%s2749_s2 + $0x20] sm:$0xff] }
  0x16   : > { %v216_v16 = vmax.f32 %v210_v10, 0.0  ;;  %v217_v17 = vmax.f32 %v211_v11, 0.0  ;;  %v218_v18 = vmax.f32 %v212_v12, 0.0 }
  0x17   : > { %v2279_v19 = vpack.i.bf16 %v215_v14, %v214_v13 }
  0x18   : > { %v2289_v20 = vpack.i.bf16 %v216_v16, %v213_v15  ;;  %v2284_v21 = vpack.i.bf16 %v218_v18, %v217_v17  ;;  %v2465_v23 = vpack.c.bf16 %v217_v17, %v214_v13  ;;  %v2467_v24 = vpack.c.bf16 %v216_v16, %v213_v15  ;;  %v2535_v16 = vld [vmem:[%s2749_s2 + $0x28] sm:$0xff] }
  0x19   : > { %2280 = vrot.lane.b32.xlu0 %v2279_v19, %s2409_s23  ;;  %v2469_v25 = vpack.c.bf16 %v218_v18, %v215_v14 }
  0x1a   : > { %2290 = vrot.lane.b32.xlu1 %v2289_v20, %s2409_s23 }
  0x1d   : > { %2285 = vrot.lane.b32.xlu0 %v2284_v21, %s2409_s23 }
  0x1e   : > { %2295 = vrot.lane.b32.xlu1 %v2279_v19, %s2410_s24 }
  0x21   : > { %2300 = vrot.lane.b32.xlu0 %v2284_v21, %s2410_s24 }
  0x22   : > { %2305 = vrot.lane.b32.xlu1 %v2289_v20, %s2410_s24 }
  0x25   : > { %2310 = vrot.lane.b32.xlu0 %v2279_v19, %s2412_s25 }
  0x26   : > { %2315 = vrot.lane.b32.xlu1 %v2284_v21, %s2412_s25 }
  0x29   : > { %2320 = vrot.lane.b32.xlu0 %v2289_v20, %s2412_s25  ;;  %s198_s25 = scalar_lea.vmem %s2751_s4, %s2260_s0 }
  0x2a   : > { %2325 = vrot.lane.b32.xlu1 %v2279_v19, %s2413_s26 }
  0x2d   : > { %2330 = vrot.lane.b32.xlu0 %v2284_v21, %s2413_s26 }
  0x2e   : > { %2335 = vrot.lane.b32.xlu1 %v2289_v20, %s2413_s26 }
  0x31   : > { %2340 = vrot.lane.b32.xlu0 %v2279_v19, %s2414_s27 }
  0x32   : > { %2345 = vrot.lane.b32.xlu1 %v2284_v21, %s2414_s27 }
  0x35   : > { %2350 = vrot.lane.b32.xlu0 %v2289_v20, %s2414_s27 }
  0x36   : > { %2355 = vrot.lane.b32.xlu1 %v2279_v19, %s2415_s28 }
  0x39   : > { %2360 = vrot.lane.b32.xlu0 %v2284_v21, %s2415_s28 }
  0x3a   : > { %2365 = vrot.lane.b32.xlu1 %v2289_v20, %s2415_s28 }
  0x3d   : > { %2370 = vrot.lane.b32.xlu0 %v2279_v19, %s2416_s29 }
  0x3e   : > { %2375 = vrot.lane.b32.xlu1 %v2284_v21, %s2416_s29 }
  0x41   : > { %2380 = vrot.lane.b32.xlu0 %v2289_v20, %s2416_s29 }
  0x42   : > { %2385 = vrot.lane.b32.xlu1 %v2279_v19, %s2417_s30 }
  0x45   : > { %2390 = vrot.lane.b32.xlu0 %v2284_v21, %s2417_s30 }
  0x46   : > { %2395 = vrot.lane.b32.xlu1 %v2289_v20, %s2417_s30 }
  0x49   : > { %1904 = vperm.xlu0 %2399, %v1900_v26  }
  0x4a   : > { %1909 = vperm.xlu1 %2400, %v1901_v27  }
  0x8b   : > { %v2281_v29 = vpop.permute.xlu0 %2280 }
  0x8c   : > { %v2291_v30 = vpop.permute.xlu1 %2290  ;;  %v2283_v31 = vunpack.i.h.bf16 %v2281_v29  ;;  %v2282_v32 = vunpack.i.l.bf16 %v2281_v29  ;;  %v2554_v29 = vld [vmem:[%s2749_s2 + $0x30] sm:$0xff] }
  0x8d   : > { %v2293_v33 = vunpack.i.h.bf16 %v2291_v30  ;;  %v2292_v34 = vunpack.i.l.bf16 %v2291_v30 }
  0x8e   : > { %v244_v41 = vsel %vm242_vm0, %v2282_v32, %v2283_v31 }
  0x8f   : > { %v2286_v35 = vpop.permute.xlu0 %2285  ;;  %v243_v43 = vsel %vm242_vm0, %v2292_v34, %v2282_v32 }
  0x90   : > { %v2288_v36 = vunpack.i.h.bf16 %v2286_v35  ;;  %v2287_v37 = vunpack.i.l.bf16 %v2286_v35  ;;  %v2477_v38 = vpop.permute.xlu1 %2295 }
  0x91   : > { %v2298_v39 = vunpack.i.h.bf16 %v2477_v38  ;;  %v2297_v40 = vunpack.i.l.bf16 %v2477_v38 }
  0x92   : > { %v246_v42 = vsel %vm242_vm0, %v2287_v37, %v2288_v36  ;;  %v245_v44 = vsel %vm242_vm0, %v2293_v33, %v2287_v37  ;;  %v2144_v52 = vpack.c.bf16 %v2288_v36, %v2283_v31 }
  0x93   : > { %v2481_v45 = vpop.permute.xlu0 %2300  ;;  %v2140_v46 = vpack.c.bf16 %v246_v42, %v244_v41  ;;  %v2142_v47 = vpack.c.bf16 %v245_v44, %v243_v43  ;;  %v587_v51 = vsel %vm585_vm1, %v2297_v40, %v2298_v39  ;;  %v220_v41 = vld [vmem:[%s2749_s2 + $0x8] sm:$0xff]  ;;  %v2587_v42 = vld [vmem:[%s2749_s2 + $0x38] sm:$0xff] }
  0x94   : > { %v2303_v48 = vunpack.i.h.bf16 %v2481_v45  ;;  %v2302_v49 = vunpack.i.l.bf16 %v2481_v45  ;;  %v2306_v50 = vpop.permute.xlu1 %2305 }
  0x95   : > { %v2308_v53 = vunpack.i.h.bf16 %v2306_v50  ;;  %v2307_v54 = vunpack.i.l.bf16 %v2306_v50  ;;  %2141 = vmatprep.subr.bf16.mxu1 %v2140_v46 }
  0x96   : > { %2143 = vmatpush1.bf16.msra.mxu1 %v2142_v47  ;;  %v589_v56 = vsel %vm585_vm1, %v2302_v49, %v2303_v48  ;;  %v2160_v31 = vpack.c.bf16 %v2303_v48, %v2298_v39 }
  0x97   : > { %2145 = vmatprep.subr.bf16.mxu1 %v2144_v52  ;;  %v2494_v57 = vpop.permute.xlu0 %2310  ;;  %v2156_v58 = vpack.c.bf16 %v589_v56, %v587_v51  ;;  %v586_v59 = vsel %vm585_vm1, %v2307_v54, %v2297_v40  ;;  %v588_v60 = vsel %vm585_vm1, %v2308_v53, %v2302_v49  ;;  %v2609_v53 = vld [vmem:[%s2749_s2 + $0x40] sm:$0xff] }
  0x98   : > { %v2313_v61 = vunpack.i.h.bf16 %v2494_v57  ;;  %v2312_v62 = vunpack.i.l.bf16 %v2494_v57  ;;  %v2158_v63 = vpack.c.bf16 %v588_v60, %v586_v59  ;;  %v2500_v0 = vpop.permute.xlu1 %2315 }
  0x99   : > { %1989 = vmatmul.mubr.msk.f32.vlgmr.msra.gmra.mrb[0].mxu1 %vm253_vm2, %v1987_v55  ;;  %2157 = vmatprep.subr.bf16.mxu0 %v2156_v58  ;;  %v2318_v1 = vunpack.i.h.bf16 %v2500_v0  ;;  %v2317_v2 = vunpack.i.l.bf16 %v2500_v0 }
  0x9a   : > { %2147 = vmatpush3.bf16.msra.mxu1 %v2144_v52  ;;  %2159 = vmatpush1.bf16.msra.mxu0 %v2158_v63  ;;  %v777_v5 = vsel %vm775_vm3, %v2312_v62, %v2313_v61  ;;  %v2630_v63 = vld [vmem:[%s2749_s2 + $0x48] sm:$0xff] }
  0x9b   : > { %v2321_v6 = vpop.permute.xlu0 %2320  ;;  %330 = vmatprep.mubr.f32.mxu1 %v2411_v22  ;;  %2149 = vmatprep.subr.bf16.mxu1 %v2465_v23  ;;  %v779_v7 = vsel %vm775_vm3, %v2317_v2, %v2318_v1  ;;  %v2168_v54 = vpack.c.bf16 %v2318_v1, %v2313_v61 }
  0x9c   : > { %v2323_v8 = vunpack.i.h.bf16 %v2321_v6  ;;  %v2322_v9 = vunpack.i.l.bf16 %v2321_v6  ;;  %v2521_v10 = vpop.permute.xlu1 %2325  ;;  %v2164_v11 = vpack.c.bf16 %v779_v7, %v777_v5 }
  0x9d   : > { %1990 = vmatmul.mubr.msk.f32.gmra.mrb[2].mxu1 %vm253_vm2, %v1988_v3  ;;  %1999 = vmatmul.mubr.msk.f32.vlgmr.msra.gmra.mrb[0].mxu0 %vm253_vm2, %v2511_v4  ;;  %v2328_v12 = vunpack.i.h.bf16 %v2521_v10  ;;  %v2327_v13 = vunpack.i.l.bf16 %v2521_v10 }
  0x9e   : > { %v776_v14 = vsel %vm775_vm3, %v2322_v9, %v2312_v62  ;;  %v778_v15 = vsel %vm775_vm3, %v2323_v8, %v2317_v2  ;;  %2081 = vmatprep.mubr.msk.f32.mxu1 %vm253_vm2, %v1987_v55  ;;  %672 = vmatprep.mubr.f32.mxu0 %v2411_v22 }
  0x9f   : > { %v2166_v17 = vpack.c.bf16 %v778_v15, %v776_v14  ;;  %2165 = vmatprep.subr.bf16.mxu0 %v2164_v11  ;;  %v2537_v18 = vpop.permute.xlu0 %2330  ;;  %v967_v27 = vsel %vm965_vm4, %v2327_v13, %v2328_v12 }
  0xa0   : > { %v2333_v19 = vunpack.i.h.bf16 %v2537_v18  ;;  %v2332_v20 = vunpack.i.l.bf16 %v2537_v18  ;;  %v2336_v21 = vpop.permute.xlu1 %2335  ;;  %v2016_v18 = vld [vmem:[%s2749_s2 + $0x58] sm:$0xff] }
  0xa1   : > { %2082 = vmatmul.mubr.msk.f32.vlgmr.msra.gmra.mrb[4].mxu1 %vm253_vm2, %v1988_v3  ;;  %2000 = vmatmul.mubr.msk.f32.gmra.mrb[2].mxu0 %vm253_vm2, %v2535_v16  ;;  %v2338_v23 = vunpack.i.h.bf16 %v2336_v21  ;;  %v2337_v26 = vunpack.i.l.bf16 %v2336_v21 }
  0xa2   : > { %2151 = vmatpush1.bf16.msra.mxu1 %v2467_v24  ;;  %2167 = vmatpush1.bf16.msra.mxu0 %v2166_v17  ;;  %v969_v30 = vsel %vm965_vm4, %v2332_v20, %v2333_v19  ;;  %v2176_v14 = vpack.c.bf16 %v2333_v19, %v2328_v12 }
  0xa3   : > { %v968_v24 = vsel %vm965_vm4, %v2338_v23, %v2332_v20  ;;  %v966_v32 = vsel %vm965_vm4, %v2337_v26, %v2327_v13  ;;  %482 = vmatprep.mubr.f32.mxu1 %v2411_v22  ;;  %2153 = vmatprep.subr.bf16.mxu1 %v2469_v25  ;;  %v2567_v33 = vpop.permute.xlu0 %2340  ;;  %v2172_v36 = vpack.c.bf16 %v969_v30, %v967_v27 }
  0xa4   : > { %856 = vmatprep.mubr.f32.mxu0 %v2411_v22  ;;  %v2343_v34 = vunpack.i.h.bf16 %v2567_v33  ;;  %v2342_v35 = vunpack.i.l.bf16 %v2567_v33  ;;  %v2572_v37 = vpop.permute.xlu1 %2345  ;;  %v2174_v40 = vpack.c.bf16 %v968_v24, %v966_v32 }
  0xa5   : > { %1993 = vmatmul.mubr.msk.f32.vlgmr.msra.gmra.mrb[0].mxu1 %vm253_vm2, %v219_v28  ;;  %2005 = vmatmul.mubr.msk.f32.vlgmr.msra.gmra.mrb[0].mxu0 %vm253_vm2, %v2554_v29  ;;  %v2348_v38 = vunpack.i.h.bf16 %v2572_v37  ;;  %v2347_v39 = vunpack.i.l.bf16 %v2572_v37  ;;  %v2027_v37 = vld [vmem:[%s2749_s2 + $0x70] sm:$0xff] }
  0xa6   : > { %2155 = vmatpush3.bf16.msra.mxu1 %v2469_v25  ;;  %488 = vmatprep.mubr.f32.mxu1 %v2411_v22  ;;  %v1157_v43 = vsel %vm1155_vm5, %v2342_v35, %v2343_v34 }
  0xa7   : > { %2161 = vmatprep.subr.bf16.mxu1 %v2160_v31  ;;  %862 = vmatprep.mubr.f32.mxu0 %v2411_v22  ;;  %v2351_v44 = vpop.permute.xlu0 %2350  ;;  %v1159_v25 = vsel %vm1155_vm5, %v2347_v39, %v2348_v38 }
  0xa8   : > { %2173 = vmatprep.subr.bf16.mxu0 %v2172_v36  ;;  %v2353_v45 = vunpack.i.h.bf16 %v2351_v44  ;;  %v2352_v46 = vunpack.i.l.bf16 %v2351_v44  ;;  %v2596_v47 = vpop.permute.xlu1 %2355  ;;  %v2180_v48 = vpack.c.bf16 %v1159_v25, %v1157_v43  ;;  %v2022_v44 = vld [vmem:[%s2749_s2 + $0x68] sm:$0xff]  ;;  %v2028_v25 = vld [vmem:[%s2749_s2 + $0x78] sm:$0xff] }
  0xa9   : > { %1994 = vmatmul.mubr.msk.f32.gmra.mrb[2].mxu1 %vm253_vm2, %v220_v41  ;;  %2006 = vmatmul.mubr.msk.f32.gmra.mrb[2].mxu0 %vm253_vm2, %v2587_v42  ;;  %v2358_v49 = vunpack.i.h.bf16 %v2596_v47  ;;  %v2357_v50 = vunpack.i.l.bf16 %v2596_v47  ;;  %v2034_v47 = vld [vmem:[%s2749_s2 + $0x88] sm:$0xff] }
  0xaa   : > { %2175 = vmatpush1.bf16.msra.mxu0 %v2174_v40  ;;  %v1156_v51 = vsel %vm1155_vm5, %v2352_v46, %v2342_v35  ;;  %v1158_v52 = vsel %vm1155_vm5, %v2353_v45, %v2347_v39  ;;  %2088 = vmatprep.mubr.msk.f32.mxu1 %vm253_vm2, %v219_v28  ;;  %v2021_v35 = vld [vmem:[%s2749_s2 + $0x60] sm:$0xff] }
  0xab   : > { %v2182_v55 = vpack.c.bf16 %v1158_v52, %v1156_v51  ;;  %1046 = vmatprep.mubr.f32.mxu0 %v2411_v22  ;;  %2181 = vmatprep.subr.bf16.mxu0 %v2180_v48  ;;  %v2616_v56 = vpop.permute.xlu0 %2360  ;;  %v1347_v62 = vsel %vm1345_vm6, %v2357_v50, %v2358_v49  ;;  %v2033_v45 = vld [vmem:[%s2749_s2 + $0x80] sm:$0xff] }
  0xac   : > { %v2363_v58 = vunpack.i.h.bf16 %v2616_v56  ;;  %v2362_v59 = vunpack.i.l.bf16 %v2616_v56  ;;  %v2366_v60 = vpop.permute.xlu1 %2365 }
  0xad   : > { %2089 = vmatmul.mubr.msk.f32.vlgmr.msra.gmra.mrb[4].mxu1 %vm253_vm2, %v220_v41  ;;  %2011 = vmatmul.mubr.msk.f32.vlgmr.msra.gmra.mrb[0].mxu0 %vm253_vm2, %v2609_v53  ;;  %v2368_v57 = vunpack.i.h.bf16 %v2366_v60  ;;  %v2367_v61 = vunpack.i.l.bf16 %v2366_v60 }
  0xae   : > { %2163 = vmatpush3.bf16.msra.mxu1 %v2160_v31  ;;  %1052 = vmatprep.mubr.f32.mxu0 %v2411_v22  ;;  %v1349_v0 = vsel %vm1345_vm6, %v2362_v59, %v2363_v58 }
  0xaf   : > { %2169 = vmatprep.subr.bf16.mxu1 %v2168_v54  ;;  %2183 = vmatpush1.bf16.msra.mxu0 %v2182_v55  ;;  %v2635_v1 = vpop.permute.xlu0 %2370  ;;  %v2188_v2 = vpack.c.bf16 %v1349_v0, %v1347_v62  ;;  %v1348_v3 = vsel %vm1345_vm6, %v2368_v57, %v2362_v59  ;;  %v1346_v5 = vsel %vm1345_vm6, %v2367_v61, %v2357_v50 }
  0xb0   : > { %2095 = vmatprep.mubr.msk.f32.mxu1 %vm253_vm2, %v2511_v4  ;;  %v2373_v6 = vunpack.i.h.bf16 %v2635_v1  ;;  %v2372_v7 = vunpack.i.l.bf16 %v2635_v1  ;;  %v2643_v8 = vpop.permute.xlu1 %2375  ;;  %v2015_v4 = vld [vmem:[%s2749_s2 + $0x50] sm:$0xff]  ;;  %v2190_v15 = vpack.c.bf16 %v1348_v3, %v1346_v5 }
  0xb1   : > { %2012 = vmatmul.mubr.msk.f32.gmra.mrb[2].mxu0 %vm253_vm2, %v2630_v63  ;;  %2189 = vmatprep.subr.bf16.mxu0 %v2188_v2  ;;  %v2378_v9 = vunpack.i.h.bf16 %v2643_v8  ;;  %v2377_v11 = vunpack.i.l.bf16 %v2643_v8 }
  0xb2   : > { %1236 = vmatprep.mubr.f32.mxu0 %v2411_v22  ;;  %v1537_v13 = vsel %vm1535_vm7, %v2372_v7, %v2373_v6 }
  0xb3   : > { %v2381_v17 = vpop.permute.xlu0 %2380  ;;  %v1539_v20 = vsel %vm1535_vm7, %v2377_v11, %v2378_v9  ;;  %v2200_v46 = vpack.c.bf16 %v2378_v9, %v2373_v6 }
  0xb4   : > { %v2383_v21 = vunpack.i.h.bf16 %v2381_v17  ;;  %v2382_v23 = vunpack.i.l.bf16 %v2381_v17  ;;  %v2663_v26 = vpop.permute.xlu1 %2385  ;;  %v2196_v27 = vpack.c.bf16 %v1539_v20, %v1537_v13 }
  0xb5   : > { %2096 = vmatmul.mubr.msk.f32.vlgmr.msra.gmra.mrb[4].mxu1 %vm253_vm2, %v2535_v16  ;;  %2017 = vmatmul.mubr.msk.f32.vlgmr.msra.gmra.mrb[0].mxu0 %vm253_vm2, %v2015_v4  ;;  %v2388_v10 = vunpack.i.h.bf16 %v2663_v26  ;;  %v2387_v12 = vunpack.i.l.bf16 %v2663_v26 }
  0xb6   : > { %2171 = vmatpush3.bf16.msra.mxu1 %v2168_v54  ;;  %1242 = vmatprep.mubr.f32.mxu0 %v2411_v22  ;;  %v1536_v28 = vsel %vm1535_vm7, %v2382_v23, %v2372_v7  ;;  %v1538_v16 = vsel %vm1535_vm7, %v2383_v21, %v2377_v11 }
  0xb7   : > { %2177 = vmatprep.subr.bf16.mxu1 %v2176_v14  ;;  %2191 = vmatpush1.bf16.msra.mxu0 %v2190_v15  ;;  %v2391_v19 = vpop.permute.xlu0 %2390  ;;  %v1727_v32 = vsel %vm1725_vm8, %v2387_v12, %v2388_v10  ;;  %v2198_v39 = vpack.c.bf16 %v1538_v16, %v1536_v28 }
  0xb8   : > { %2102 = vmatprep.mubr.msk.f32.mxu1 %vm253_vm2, %v2554_v29  ;;  %2197 = vmatprep.subr.bf16.mxu0 %v2196_v27  ;;  %v2393_v30 = vunpack.i.h.bf16 %v2391_v19  ;;  %v2392_v31 = vunpack.i.l.bf16 %v2391_v19  ;;  %v2396_v24 = vpop.permute.xlu1 %2395  ;;  %v2184_v29 = vpack.c.bf16 %v2348_v38, %v2343_v34  ;;  %v2192_v38 = vpack.c.bf16 %v2363_v58, %v2358_v49 }
  0xb9   : > { %2018 = vmatmul.mubr.msk.f32.gmra.mrb[2].mxu0 %vm253_vm2, %v2016_v18  ;;  %v2398_v40 = vunpack.i.h.bf16 %v2396_v24  ;;  %v2397_v41 = vunpack.i.l.bf16 %v2396_v24 }
  0xba   : > { %1426 = vmatprep.mubr.f32.mxu0 %v2411_v22  ;;  %v1729_v36 = vsel %vm1725_vm8, %v2392_v31, %v2393_v30  ;;  %v2208_v48 = vpack.c.bf16 %v2393_v30, %v2388_v10 }
  0xbb   : > { %v2204_v43 = vpack.c.bf16 %v1729_v36, %v1727_v32  ;;  %v1728_v33 = vsel %vm1725_vm8, %v2398_v40, %v2392_v31  ;;  %v1726_v34 = vsel %vm1725_vm8, %v2397_v41, %v2387_v12 }
  0xbd   : > { %2103 = vmatmul.mubr.msk.f32.vlgmr.msra.gmra.mrb[4].mxu1 %vm253_vm2, %v2587_v42  ;;  %2023 = vmatmul.mubr.msk.f32.vlgmr.msra.gmra.mrb[0].mxu0 %vm253_vm2, %v2021_v35  ;;  %v2206_v42 = vpack.c.bf16 %v1728_v33, %v1726_v34 }
  0xbe   : > { %2179 = vmatpush3.bf16.msra.mxu1 %v2176_v14  ;;  %1432 = vmatprep.mubr.f32.mxu0 %v2411_v22 }
  0xbf   : > { %2185 = vmatprep.subr.bf16.mxu1 %v2184_v29  ;;  %2199 = vmatpush1.bf16.msra.mxu0 %v2198_v39 }
  0xc0   : > { %2109 = vmatprep.mubr.msk.f32.mxu1 %vm253_vm2, %v2609_v53  ;;  %2205 = vmatprep.subr.bf16.mxu0 %v2204_v43 }
  0xc1   : > { %2024 = vmatmul.mubr.msk.f32.gmra.mrb[2].mxu0 %vm253_vm2, %v2022_v44 }
  0xc2   : > { %1616 = vmatprep.mubr.f32.mxu0 %v2411_v22 }
  0xc5   : > { %2110 = vmatmul.mubr.msk.f32.vlgmr.msra.gmra.mrb[4].mxu1 %vm253_vm2, %v2630_v63  ;;  %2029 = vmatmul.mubr.msk.f32.vlgmr.msra.gmra.mrb[0].mxu0 %vm253_vm2, %v2027_v37 }
  0xc6   : > { %2187 = vmatpush3.bf16.msra.mxu1 %v2184_v29  ;;  %1622 = vmatprep.mubr.f32.mxu0 %v2411_v22 }
  0xc7   : > { %2193 = vmatprep.subr.bf16.mxu1 %v2192_v38  ;;  %2207 = vmatpush1.bf16.msra.mxu0 %v2206_v42 }
  0xc8   : > { %2116 = vmatprep.mubr.msk.f32.mxu1 %vm253_vm2, %v2015_v4  ;;  %v1905_v53 = vpop.permute.xlu0 %1904 }
  0xc9   : > { %2030 = vmatmul.mubr.msk.f32.gmra.mrb[2].mxu0 %vm253_vm2, %v2028_v25  ;;  %v1910_v62 = vpop.permute.xlu1 %1909 }
  0xca   : > { %1806 = vmatprep.mubr.f32.mxu0 %v2411_v22 }
  0xcd   : > { %2117 = vmatmul.mubr.msk.f32.vlgmr.msra.gmra.mrb[4].mxu1 %vm253_vm2, %v2016_v18  ;;  %2035 = vmatmul.mubr.msk.f32.vlgmr.msra.gmra.mrb[0].mxu0 %vm253_vm2, %v2033_v45 }
  0xce   : > { %2195 = vmatpush3.bf16.msra.mxu1 %v2192_v38  ;;  %1812 = vmatprep.mubr.f32.mxu0 %v2411_v22 }
  0xcf   : > { %2201 = vmatprep.subr.bf16.mxu1 %v2200_v46  ;;  %2123 = vmatprep.mubr.msk.f32.mxu1 %vm253_vm2, %v2021_v35 }
  0xd1   : > { %2036 = vmatmul.mubr.msk.f32.gmra.mrb[2].mxu0 %vm253_vm2, %v2034_v47 }
  0xd5   : > { %2124 = vmatmul.mubr.msk.f32.vlgmr.msra.gmra.mrb[4].mxu1 %vm253_vm2, %v2022_v44 }
  0xd6   : > { %2203 = vmatpush3.bf16.msra.mxu1 %v2200_v46  ;;  %2130 = vmatprep.mubr.msk.f32.mxu1 %vm253_vm2, %v2027_v37 }
  0xd7   : > { %2209 = vmatprep.subr.bf16.mxu1 %v2208_v48 }
  0xdd   : > { %2131 = vmatmul.mubr.msk.f32.vlgmr.msra.gmra.mrb[4].mxu1 %vm253_vm2, %v2028_v25 }
  0xde   : > { %2211 = vmatpush3.bf16.msra.mxu1 %v2208_v48  ;;  %2137 = vmatprep.mubr.msk.f32.mxu1 %vm253_vm2, %v2033_v45 }
  0xe5   : > { %2138 = vmatmul.mubr.msk.f32.vlgmr.msra.gmra.mrb[4].mxu1 %vm253_vm2, %v2034_v47 }
 0x178   : > { %v484_v22 = vpop.f32.mrb[0].mxu1 }
 0x179   : > { %v486_v49 = vpop.f32.mrb[1].mxu1 }
 0x17c   : > { %v490_v50 = vpop.f32.mrb[2].mxu1 }
 0x17d   : > { %v492_v51 = vpop.f32.mrb[3].mxu1 }
 0x1a0   : > { %v1808_v52 = vpop.f32.mrb[0].mxu0 }
 0x1a1   : > { %v2212_v54 = vadd.f32 %v1808_v52, %v484_v22  ;;  %v1810_v55 = vpop.f32.mrb[1].mxu0 }
 0x1a2   : > { %v2213_v56 = vadd.f32 %v1810_v55, %v486_v49 }
 0x1a3   : > { %v1912_v58 = vadd.f32 %v2212_v54, %v1905_v53 }
 0x1a4   : > { %v1913_v59 = vadd.f32 %v2213_v56, %v1905_v53  ;;  %v1814_v60 = vpop.f32.mrb[2].mxu0 }
 0x1a5   : > { %1918 = vst [vmem:[%s198_s25] sm:$0xff] %v1912_v58  ;;  %v2214_v57 = vadd.f32 %v1814_v60, %v490_v50  ;;  %v1816_v61 = vpop.f32.mrb[3].mxu0 }
 0x1a6   : > { %1919 = vst [vmem:[%s198_s25 + $0x8] sm:$0xff] %v1913_v59  ;;  %v2215_v63 = vadd.f32 %v1816_v61, %v492_v51 }
 0x1a7   : > { %v1915_v0 = vadd.f32 %v2214_v57, %v1910_v62 }
 0x1a8   : > { %v1916_v1 = vadd.f32 %v2215_v63, %v1910_v62 }
 0x1a9   : > { %1922 = vst [vmem:[%s198_s25 + $0x18] sm:$0xff] %v1915_v0 }
 0x1aa   : > { %1923 = vst [vmem:[%s198_s25 + $0x20] sm:$0xff] %v1916_v1 }
 0x1b8   : > { %v2139_v2 = vpop.f32.mrb[4].mxu1 }
 0x1b9   : > { %v1917_v3 = vadd.f32 %v2139_v2, %v1910_v62  ;;  %v1885_v5 = vpop.f32.mrb[5].mxu1 }
 0x1ba   : > { %v1914_v6 = vadd.f32 %v1905_v53, %v1885_v5 }
 0x1bb   : > { %1924 = vst.msk [vmem:[%s198_s25 + $0x28] sm:$0xff] %vm1920_vm9, %v1917_v3 }
 0x1bc   : > { %1921 = vst.msk [vmem:[%s198_s25 + $0x10] sm:$0xff] %vm1920_vm9, %v1914_v6 }
 0x1bd PF: > { %s15_s17 = sadd.s32 1, %s2407_s17  }
 0x1be   : > { %p12_p4 = scmp.ge.s32.totalorder %s15_s17, 4  }
 0x1c0   :  { %14 = sbr.rel (!%p12_p4) target bundleno = 2 (0x2), region = 74 }

</bundles_post_ra>
